<compile_context>
chip_gen: v5e
topology: v5e:2x2
jax: 0.10.0
libtpu: 0.0.40
codegen_flags: <defaults>
</compile_context>

<pallas_src>
import jax
import jax.numpy as jnp
from jax.experimental import pallas as pl
from jax.experimental.pallas import tpu as pltpu

_LANE = 128
_SUBLANE = 8
_NEG_BIG = -1e30  # pad-class bias: exp() underflows to exactly 0, no inf arithmetic


def _round_up(x, m):
    return (x + m - 1) // m * m


def _logreg_kernel(x_ref, w_ref, b_ref, o_ref):
    # x_ref: [bn, D] (native dtype -> MXU), w_ref: [D, O_pad], b_ref: [1, O_pad] f32
    logits = jnp.dot(x_ref[...], w_ref[...], preferred_element_type=jnp.float32)
    logits = logits + b_ref[...]
    # Numerically-stable softmax along the lane dim, all in f32.
    m = jnp.max(logits, axis=-1, keepdims=True)
    e = jnp.exp(logits - m)
    denom = jnp.sum(e, axis=-1, keepdims=True)
    # Exact normalization (approx reciprocal's ~1e-3 rel. error broke sum==1).
    o_ref[...] = (e / denom).astype(o_ref.dtype)


def prepare_params(weight, bias):
    """weight: [O, D] (torch convention), bias: [O].

    Done once, not per call: transpose to [D, O_pad] and pad the class dim to a
    multiple of 128 (lane-dense output).  Padded-class bias = -1e30 so those
    classes get exactly zero softmax mass.
    Returns (w_t [D, O_pad], b2 [1, O_pad] f32, O).
    """
    O, D = weight.shape
    O_pad = _round_up(O, _LANE)
    w_t = jnp.zeros((D, O_pad), dtype=weight.dtype).at[:, :O].set(weight.T)
    b2 = jnp.full((1, O_pad), _NEG_BIG, dtype=jnp.float32).at[0, :O].set(
        bias.astype(jnp.float32))
    return w_t, b2, O


def _vmem_budget_bytes():
    """~Half of physical VMEM: 64 MiB on v5e/v6e (128 MiB), 32 MiB on v7x (64 MiB)."""
    try:
        phys = pltpu.get_tpu_info().vmem_capacity_bytes
    except Exception:
        phys = 64 * 1024 * 1024  # conservative fallback: v7x per-core VMEM
    return max(32 * 1024 * 1024, min(phys // 2, 64 * 1024 * 1024))


def _resident_bytes(d, o_pad, w_dtype):
    # W^T / bias have constant index_maps but are still double-buffered by the
    # default pipeline -> count them twice.
    # TODO(synk): pipeline_mode=pl.Buffered(1) on the W^T/bias specs would halve this.
    return 2 * (d * o_pad * jnp.dtype(w_dtype).itemsize + o_pad * 4)


def _working_bytes(block_n, d, o_pad, x_dtype, out_dtype):
    """Pipelined x/out tiles (double-buffered) + f32 softmax intermediates."""
    xb = jnp.dtype(x_dtype).itemsize
    ob = jnp.dtype(out_dtype).itemsize
    # logits + exp (+ max/sum temporaries) live as f32 [block_n, O_pad] in-body.
    return block_n * (2 * (d * xb + o_pad * ob) + int(2.5 * o_pad * 4))


def _choose_block_n(n_rows, d, o_pad, x_dtype, out_dtype, w_dtype, vmem_budget):
    resident = _resident_bytes(d, o_pad, w_dtype)
    per_row = _working_bytes(1, d, o_pad, x_dtype, out_dtype)
    avail = vmem_budget - resident
    if avail < _SUBLANE * per_row:
        # TODO(synk): add a class-tiled (online-softmax) path for very large
        # D * O_pad instead of requiring the full W^T to be VMEM-resident.
        raise ValueError(
            f"Resident W^T ({d}x{o_pad}, ~{resident} bytes double-buffered) does "
            f"not fit the VMEM budget ({vmem_budget} bytes); a class-tiled "
            "softmax path is required for this problem size.")
    cap = max(_SUBLANE, min(1024, avail // per_row))
    # Only sublane (8-row) alignment matters on the M dim (MXU alignment concerns
    # K=D and the lane dim=O_pad, already 128-padded).  Pick the tile count that
    # minimizes tail padding for this batch, then size tiles evenly.
    n8 = _round_up(max(n_rows, _SUBLANE), _SUBLANE)
    num_tiles = pl.cdiv(n8, min(cap, n8))
    return _round_up(pl.cdiv(n8, num_tiles), _SUBLANE)


def logistic_regression_prepared(x, w_t, b2, output_dim):
    """x: [N, D], w_t: [D, O_pad], b2: [1, O_pad] -> softmax probs [N, output_dim]."""
    N, D = x.shape
    O_pad = w_t.shape[1]

    budget = _vmem_budget_bytes()
    block_n = _choose_block_n(N, D, O_pad, x.dtype, x.dtype, w_t.dtype, budget)

    # Megacore (v7x has 2 TensorCores): ensure the "parallel" axis has >=2 steps
    # whenever the batch allows it.  Harmless on single-TC v5e/v6e.
    n8 = _round_up(max(N, _SUBLANE), _SUBLANE)
    if n8 > _SUBLANE and pl.cdiv(n8, block_n) < 2:
        block_n = max(_SUBLANE, _round_up(pl.cdiv(n8, 2), _SUBLANE))

    N_pad = _round_up(max(N, _SUBLANE), block_n)
    x_p = x if N_pad == N else jnp.pad(x, ((0, N_pad - N), (0, 0)))
    grid = (N_pad // block_n,)

    resident = _resident_bytes(D, O_pad, w_t.dtype)
    working = _working_bytes(block_n, D, O_pad, x.dtype, x.dtype)
    vmem_limit = int(min(budget + budget // 2,
                         max(32 * 1024 * 1024, resident + working + (8 << 20))))

    out = pl.pallas_call(
        _logreg_kernel,
        out_shape=jax.ShapeDtypeStruct((N_pad, O_pad), x.dtype),
        grid_spec=pltpu.PrefetchScalarGridSpec(
            num_scalar_prefetch=0,
            grid=grid,
            in_specs=[
                pl.BlockSpec((block_n, D), lambda i: (i, 0)),   # x tile (pipelined)
                pl.BlockSpec((D, O_pad), lambda i: (0, 0)),     # full W^T (resident)
                pl.BlockSpec((1, O_pad), lambda i: (0, 0)),     # bias   (resident)
            ],
            out_specs=pl.BlockSpec((block_n, O_pad), lambda i: (i, 0)),
        ),
        compiler_params=pltpu.CompilerParams(
            dimension_semantics=("parallel",),
            vmem_limit_bytes=vmem_limit),
    )(x_p, w_t, b2)

    return out[:N, :output_dim]


def logistic_regression(x, weight, bias):
    """Convenience wrapper: weight [O, D] (torch convention), bias [O]."""
    w_t, b2, O = prepare_params(weight, bias)
    return logistic_regression_prepared(x, w_t, b2, O)


if __name__ == "__main__":
    key = jax.random.PRNGKey(0)
    kx, kw, kb, kx2 = jax.random.split(key, 4)

    # Small shapes consistent with LogisticRegression(input_dim, output_dim)
    N, input_dim, output_dim = 8, 32, 16
    x = jax.random.normal(kx, (N, input_dim), dtype=jnp.float32)
    bound = 1.0 / (input_dim ** 0.5)
    weight = jax.random.uniform(kw, (output_dim, input_dim), jnp.float32, -bound, bound)
    bias = jax.random.uniform(kb, (output_dim,), jnp.float32, -bound, bound)

    # Parameters prepared once (transpose + lane padding hoisted out of hot path).
    w_t, b2, O = prepare_params(weight, bias)

    out = jax.block_until_ready(logistic_regression_prepared(x, w_t, b2, O))
    ref = jax.nn.softmax(x @ weight.T + bias, axis=-1)
    assert out.shape == (N, output_dim)
    assert jnp.allclose(out, ref, atol=1e-3, rtol=1e-3)
    assert jnp.allclose(jnp.sum(out, axis=-1), 1.0, atol=1e-3)

    # Second case: exercises batch tiling, N padding, and a >=2-step grid.
    N2 = 300
    x2 = jax.random.normal(kx2, (N2, input_dim), dtype=jnp.float32)
    out2 = jax.block_until_ready(logistic_regression_prepared(x2, w_t, b2, O))
    ref2 = jax.nn.softmax(x2 @ weight.T + bias, axis=-1)
    assert out2.shape == (N2, output_dim)
    assert jnp.allclose(out2, ref2, atol=1e-3, rtol=1e-3)
    assert jnp.allclose(jnp.sum(out2, axis=-1), 1.0, atol=1e-3)

    print("KERNEL_OK")
</pallas_src>

<mosaic_0001>
module attributes {stable_mosaic.version = 11 : i64} {
  func.func @_logreg_kernel(%arg0: i32, %arg1: memref<8x32xf32, #tpu.memory_space<vmem>>, %arg2: memref<32x128xf32, #tpu.memory_space<vmem>>, %arg3: memref<1x128xf32, #tpu.memory_space<vmem>>, %arg4: memref<8x128xf32, #tpu.memory_space<vmem>>) attributes {dimension_semantics = [#tpu.dimension_semantics<parallel>], iteration_bounds = array<i64: 1>, scalar_prefetch = 0 : i64, scratch_operands = 0 : i64, tpu.core_type = #tpu.core_type<tc>, window_params = [{transform_indices = @transform_0, window_bounds = array<i64: 8, 32>}, {pipeline_mode = #tpu.pipeline_mode<synchronous>, transform_indices = @transform_1, window_bounds = array<i64: 32, 128>}, {pipeline_mode = #tpu.pipeline_mode<synchronous>, transform_indices = @transform_2, window_bounds = array<i64: 1, 128>}, {transform_indices = @transform_3, window_bounds = array<i64: 8, 128>}]} {
    %c0 = arith.constant 0 : index
    %c0_0 = arith.constant 0 : index
    %0 = vector.load %arg1[%c0, %c0_0] : memref<8x32xf32, #tpu.memory_space<vmem>>, vector<8x32xf32>
    %c0_1 = arith.constant 0 : index
    %c0_2 = arith.constant 0 : index
    %1 = vector.load %arg2[%c0_1, %c0_2] : memref<32x128xf32, #tpu.memory_space<vmem>>, vector<32x128xf32>
    %cst = arith.constant dense<0.000000e+00> : vector<8x128xf32>
    %2 = tpu.matmul %0, %1, %cst {dimension_numbers = #tpu.dot_dimension_numbers<[1], [0], [0], [1], [0, 0, 1, 1], [], []>} : vector<8x32xf32>, vector<32x128xf32>, vector<8x128xf32> -> vector<8x128xf32>
    %c0_3 = arith.constant 0 : index
    %c0_4 = arith.constant 0 : index
    %3 = vector.load %arg3[%c0_3, %c0_4] : memref<1x128xf32, #tpu.memory_space<vmem>>, vector<1x128xf32>
    %4 = vector.broadcast %3 : vector<1x128xf32> to vector<8x128xf32>
    %5 = arith.addf %2, %4 : vector<8x128xf32>
    %cst_5 = arith.constant dense<0xFF800000> : vector<8xf32>
    %6 = vector.multi_reduction <maximumf>, %5, %cst_5 [1] : vector<8x128xf32> to vector<8xf32>
    %7 = vector.shape_cast %6 : vector<8xf32> to vector<8x1xf32>
    %8 = vector.broadcast %7 : vector<8x1xf32> to vector<8x128xf32>
    %9 = arith.subf %5, %8 : vector<8x128xf32>
    %10 = math.exp %9 : vector<8x128xf32>
    %cst_6 = arith.constant dense<0.000000e+00> : vector<8xf32>
    %11 = vector.multi_reduction <add>, %10, %cst_6 [1] : vector<8x128xf32> to vector<8xf32>
    %12 = vector.shape_cast %11 : vector<8xf32> to vector<8x1xf32>
    %13 = vector.broadcast %12 : vector<8x1xf32> to vector<8x128xf32>
    %14 = arith.divf %10, %13 : vector<8x128xf32>
    %c0_7 = arith.constant 0 : index
    %c0_8 = arith.constant 0 : index
    %15 = vector.load %arg4[%c0_7, %c0_8] : memref<8x128xf32, #tpu.memory_space<vmem>>, vector<8x128xf32>
    tpu.vector_store %arg4[%c0_7, %c0_8], %14 {strides = array<i32>} : memref<8x128xf32, #tpu.memory_space<vmem>>, vector<8x128xf32>,
    return
  }
  func.func @transform_0(%arg0: i32) -> (i32, i32) {
    %c0_i32 = arith.constant 0 : i32
    %c0_i32_0 = arith.constant 0 : i32
    return %arg0, %c0_i32 : i32, i32
  }
  func.func @transform_1(%arg0: i32) -> (i32, i32) {
    %c0_i32 = arith.constant 0 : i32
    %c0_i32_0 = arith.constant 0 : i32
    %c0_i32_1 = arith.constant 0 : i32
    return %c0_i32, %c0_i32_0 : i32, i32
  }
  func.func @transform_2(%arg0: i32) -> (i32, i32) {
    %c0_i32 = arith.constant 0 : i32
    %c0_i32_0 = arith.constant 0 : i32
    %c0_i32_1 = arith.constant 0 : i32
    return %c0_i32, %c0_i32_0 : i32, i32
  }
  func.func @transform_3(%arg0: i32) -> (i32, i32) {
    %c0_i32 = arith.constant 0 : i32
    %c0_i32_0 = arith.constant 0 : i32
    return %arg0, %c0_i32 : i32, i32
  }
}

</mosaic_0001>

<bundles_post_ra>
// kernel: tpu_custom_call.1
= control target key start
LH: loop header
LB: loop body
LE: loop exit
PB: predicated region body
PF: predicated region fallthrough
CT: control target
= control target key end

     0   :  { %8 = vsyncpa [#allocation3], 0  ;;  %s245_s0 = inlined_call_operand.hbm [shape: f32[8,32], index: 0, kind: input, shape index: {}]   ;;  %s246_s1 = inlined_call_operand.hbm [shape: f32[32,128], index: 1, kind: input, shape index: {}]   ;;  %s247_s2 = inlined_call_operand.vmem [shape: f32[1,128], index: 2, kind: input, shape index: {}]   ;;  %s248_s3 = inlined_call_operand.hbm [shape: f32[8,128], index: 3, kind: output, shape index: {}]  }
   0x1   :  { %9 = vsyncpa [#allocation6], 0 }
   0x2   :  { %10 = vsyncpa [#allocation4], 0  ;;  %s16_s14 = sshll.u32 %s245_s0, 4  ;;  %s208_s15 = smov [#allocation2]   ;;  %s17_s14 = int_to_ptr.hbm [resolvable:$true] %s16_s14 }
   0x3   :  { %s18_s16 = sshll.u32 %s208_s15, 4  ;;  %s26_s19 = sshll.u32 %s246_s1, 4  ;;  %s19_s16 = int_to_ptr.vmem [resolvable:$true] %s18_s16  ;;  %s27_s19 = int_to_ptr.hbm [resolvable:$true] %s26_s19 }
   0x4   :  { %21 = dma.hbm_to_vmem [thread:$0]  %s17_s14, 128, %s19_s16, [#allocation3]  }
   0x5   :  { %s209_s20 = smov [#allocation5]   ;;  %s210_s22 = smov 128  }
   0x6   :  { %s28_s21 = sshll.u32 %s209_s20, 4  ;;  %s211_s23 = smov 8   ;;  %s29_s21 = int_to_ptr.vmem [resolvable:$true] %s28_s21 }
   0x7   :  { %34 = dma.hbm_to_vmem [thread:$0]  %s27_s19, 512, %s29_s21, [#allocation6], %s210_s22, %s210_s22, %s211_s23  }
   0x8   :  { %202 = dma.done.wait [#allocation3], 128  }
   0x9   :  { %203 = vsyncadd [#allocation3], 4294967168 }
   0xa   :  { %204 = dma.done.wait [#allocation6], 512  }
   0xb   :  { %205 = vsyncadd [#allocation6], 4294966784  ;;  %v49_v0 = vld [vmem:[#allocation5 + $0x18] sm:$0xff]  ;;  %v48_v1 = vld [vmem:[#allocation5 + $0x10] sm:$0xff]  ;;  %vm54_vm0 = vcmask 261120   ;;  %s108_s27 = sshll.u32 %s248_s3, 4  ;;  %s109_s27 = int_to_ptr.hbm [resolvable:$true] %s108_s27 }
   0xc   :  { %70 = vmatpush.msra.mxu0 %v49_v0  ;;  %v47_v2 = vld [vmem:[#allocation5 + $0x8] sm:$0xff]  ;;  %v46_v3 = vld [vmem:[#allocation5] sm:$0xff]  ;;  %v45_v4 = vld [vmem:[#allocation2] sm:$0xff] }
   0xd   :  { %v125_v5 = vld [vmem:[%s247_s2] ss:$0 sm:$0xff]  ;;  %s212_s2 = smov [#allocation7]  }
   0xe   :  { %71 = vmatpush.msra.mxu0 %v48_v1  ;;  %s106_s24 = sshll.u32 %s212_s2, 4  ;;  %s107_s24 = int_to_ptr.vmem [resolvable:$true] %s106_s24 }
  0x10   :  { %72 = vmatpush.msra.mxu0 %v47_v2 }
  0x12   :  { %73 = vmatpush.msra.mxu0 %v46_v3 }
  0x13   :  { %119 = vmatmul.msk.f32.vlgmr.msra.gmra.mxu0 %vm54_vm0, %v45_v4 }
  0x90   :  { %v75_v6 = vpop.f32.mrf.mxu0 }
  0x91   :  { %v76_v7 = vadd.f32 %v125_v5, %v75_v6 }
  0x93   :  { %78 = vmax.xlane.f32.xlu0 %v76_v7 }
 0x106   :  { %v79_v8 = vpop.xlane.xlu0 %78 }
 0x107   :  { %v80_v9 = vsub.f32 %v76_v7, %v79_v8 }
 0x109   :  { %v81_v10 = vmul.f32 1.442695, %v80_v9 }
 0x10b   :  { %126 = vpow2.f32 %v81_v10 }
 0x111   :  { %v127_v11 = vpop.eup %126 }
 0x112   :  { %83 = vadd.xlane.f32.xlu0 %v127_v11 }
 0x185   :  { %v84_v12 = vpop.xlane.xlu0 %83 }
 0x186   :  { %128 = vrcp.f32 %v84_v12  ;;  %v96_v16 = vand.u32 2147483648, %v84_v12  ;;  %v94_v18 = vand.u32 2147483647, %v84_v12  ;;  %vm90_vm2 = vweird.f32 %v84_v12 }
 0x188   :  { %v97_v20 = vor.u32 1.1754944e-38, %v96_v16  ;;  %vm95_vm4 = vcmp.eq.f32.partialorder %v94_v18, 8.507059e+37 }
 0x18c   :  { %v129_v13 = vpop.eup %128 }
 0x18d   :  { %v86_v14 = vmul.f32 %v129_v13, %v84_v12  ;;  %vm91_vm1 = vweird.f32 %v129_v13 }
 0x18e   :  { %vm92_vm3 = vmor %vm90_vm2, %vm91_vm1 }
 0x18f   :  { %v87_v15 = vsub.f32 1.0, %v86_v14 }
 0x191   :  { %v88_v17 = vmul.f32 %v129_v13, %v87_v15 }
 0x193   :  { %v89_v19 = vadd.f32 %v129_v13, %v88_v17 }
 0x195   :  { %v93_v21 = vsel %vm92_vm3, %v129_v13, %v89_v19 }
 0x196   :  { %v98_v22 = vsel %vm95_vm4, %v97_v20, %v93_v21 }
 0x197   :  { %v99_v23 = vmul.f32 %v127_v11, %v98_v22 }
 0x199   :  { %100 = vst [vmem:[#allocation7] sm:$0xff] %v99_v23 }
 0x19a   :  { %111 = dma.vmem_to_hbm [thread:$0]  %s107_s24, 128, %s109_s27, [#allocation4]  }
 0x19b   :  { %206 = dma.done.wait [#allocation4], 128  }
 0x19c   :  { %207 = vsyncadd [#allocation4], 4294967168 }
 0x19d   :  { %116 = vsyncpa [#allocation3], 1 }
 0x19e   :  { %117 = vsyncpa [#allocation6], 1 }
 0x19f   :  { %118 = vsyncpa [#allocation4], 1 }

</bundles_post_ra>
